<compile_context>
chip_gen: v7x
topology: tpu7x:2x2x1
jax: 0.10.0
libtpu: 0.0.40
codegen_flags: <defaults>
</compile_context>

<pallas_src>
import numpy as np
import jax
import jax.numpy as jnp
from jax.experimental import pallas as pl
from jax.experimental.pallas import tpu as pltpu

_LANE = 128             # vreg lane width: last dim of the 2-D view
_MAX_BLOCK_ROWS = 1024  # 1024x128 f32 block = 512 KiB; in+out double-buffered ~= 2 MiB


def _threshold_mask_kernel(thresh_ref, loss_ref, mask_ref):
    # thresh_ref: (1, 1) float32 in SMEM; loss_ref / mask_ref: (block_rows, 128) VMEM tiles.
    t = thresh_ref[0, 0]
    # If the call site multiplies the mask into the loss immediately, fold `* loss_ref[...]`
    # here and return the masked loss instead (removes one full-array HBM write + read).
    mask_ref[...] = (loss_ref[...] < t).astype(mask_ref.dtype)


def threshold_mask(loss, threshold):
    """mask = (loss < threshold).astype(loss.dtype), computed with a tiled Pallas kernel."""
    orig_shape = loss.shape
    dtype = loss.dtype
    flat = loss.reshape(-1)
    n = flat.shape[0]

    # Lane-align only when needed; when n % 128 == 0 there is no pad and no extra copy.
    pad = (-n) % _LANE
    if pad:
        flat = jnp.pad(flat, (0, pad))
    rows = (n + pad) // _LANE
    x = flat.reshape(rows, _LANE)

    # Row-block: a multiple of 8 sublanes (or the full row dim when rows <= 8). Pallas
    # handles the partial edge block when block_rows does not divide rows.
    if rows <= 8:
        block_rows = rows
    else:
        block_rows = min(_MAX_BLOCK_ROWS, rows) & ~7

    thresh = jnp.full((1, 1), threshold, dtype=jnp.float32)
    out = pl.pallas_call(
        _threshold_mask_kernel,
        out_shape=jax.ShapeDtypeStruct((rows, _LANE), dtype),
        grid=(pl.cdiv(rows, block_rows),),
        in_specs=[
            pl.BlockSpec(memory_space=pltpu.MemorySpace.SMEM),    # scalar threshold (fetched once)
            pl.BlockSpec((block_rows, _LANE), lambda i: (i, 0)),  # loss tile
        ],
        out_specs=pl.BlockSpec((block_rows, _LANE), lambda i: (i, 0)),
        compiler_params=pltpu.CompilerParams(
            dimension_semantics=("parallel",)),  # shards the row axis across v7x's 2 TCs
    )(thresh, x)

    out_flat = out.reshape(-1)
    if pad:
        out_flat = out_flat[:n]
    return out_flat.reshape(orig_shape)


class LossDropperPallas:
    """JAX/Pallas port of LossDropper. Host-side numpy state mirrors the PyTorch module."""

    def __init__(self, dropc=0.4, min_count=10000, buffer_size=10000, verbose=True):
        self.keepc = 1.0 - dropc
        self.count = 0
        self.min_count = min_count
        self.buffer_size = buffer_size
        self.accumulative_computed = 0
        self.percentile_val = 100000000.0
        self.buffer_cur_idx = 0
        self.verbose = verbose
        self.buffer_zone = np.zeros(self.buffer_size, dtype=np.float32)
        # Deferred circular-buffer writes: (device_array, host dest-index array) pairs.
        # They are only materialized (one batched device_get) when a percentile
        # recompute actually needs the buffer contents.
        self._pending = []

    def _queue_write(self, loss_flat_dev, dest_idx):
        self._pending.append((loss_flat_dev, dest_idx))

    def _flush_pending(self):
        if not self._pending:
            return
        host_vals = jax.device_get([d for d, _ in self._pending])  # single host sync
        for vals, (_, idx) in zip(host_vals, self._pending):
            # Vectorized write; duplicate indices (numel > buffer_size) keep the last
            # value, matching the reference's sequential per-element loop.
            self.buffer_zone[idx] = np.asarray(vals, dtype=np.float32).reshape(-1)
        self._pending = []

    def __call__(self, loss):
        if loss is None:
            return loss
        numel = int(loss.size)
        self.accumulative_computed += numel
        self.count += numel
        flat = loss.reshape(-1)

        if self.count < self.buffer_size:
            # Contiguous fill while the buffer is not yet full (reference branch 2).
            dest = np.arange(self.count - numel, self.count)
            self._queue_write(flat, dest)
            self.buffer_cur_idx += numel
            # Warm-up short-circuit: threshold is +inf, so the exact reference result
            # (NaN/inf compare to False) is a trivial jnp compare -- no kernel launch.
            return (loss < jnp.inf).astype(loss.dtype)
        else:
            # Circular write (reference branch: per-element loop, vectorized here).
            dest = (self.buffer_cur_idx + np.arange(numel)) % self.buffer_size
            self._queue_write(flat, dest)
            self.buffer_cur_idx = int((self.buffer_cur_idx + numel) % self.buffer_size)

        if self.count < self.min_count:
            return (loss < jnp.inf).astype(loss.dtype)

        if self.accumulative_computed > self.buffer_size:
            self._flush_pending()
            # TODO(synk): sort-based np.percentile over the host circular buffer has no
            # clean Pallas equivalent; kept on host exactly as the original module does.
            self.percentile_val = float(np.percentile(self.buffer_zone, self.keepc * 100))
            if self.verbose:
                print('Using cutoff', self.percentile_val)
            self.accumulative_computed = 0

        return threshold_mask(loss, self.percentile_val)


if __name__ == "__main__":
    key = jax.random.PRNGKey(0)

    # 1) Standalone kernel checks vs a plain-JAX reference. Covers: lane-aligned input
    #    (1024), multi-block grid with a partial edge block (2560), ragged tail + pad (2065).
    for n in (1024, 2560, 2065):
        key, sub = jax.random.split(key)
        x = jax.random.normal(sub, (n,), dtype=jnp.float32)
        got = jax.block_until_ready(threshold_mask(x, 0.25))
        want = (x < 0.25).astype(x.dtype)
        assert got.shape == x.shape and got.dtype == x.dtype
        assert bool(jnp.all(got == want))

    # 2) Full LossDropper forward with a shrunken buffer/min_count so every branch runs:
    #    contiguous fill -> circular write -> percentile recompute -> steady-state masking.
    dropper = LossDropperPallas(dropc=0.4, min_count=16, buffer_size=16, verbose=False)
    mask = None
    for _ in range(5):
        key, sub = jax.random.split(key)
        loss = jax.random.uniform(sub, (8,), dtype=jnp.float32)
        mask = dropper(loss)

    mask = jax.block_until_ready(mask)
    assert mask.shape == (8,)
    assert mask.dtype == jnp.float32
    assert bool(jnp.all((mask == 0.0) | (mask == 1.0)))
    print("KERNEL_OK")
</pallas_src>

<mosaic_0001>
module attributes {stable_mosaic.version = 11 : i64} {
  func.func @_threshold_mask_kernel(%arg0: i32, %arg1: memref<1x1xf32, #tpu.memory_space<smem>>, %arg2: memref<8x128xf32, #tpu.memory_space<vmem>>, %arg3: memref<8x128xf32, #tpu.memory_space<vmem>>) attributes {dimension_semantics = [#tpu.dimension_semantics<parallel>], iteration_bounds = array<i64: 1>, scalar_prefetch = 0 : i64, scratch_operands = 0 : i64, tpu.core_type = #tpu.core_type<tc>, window_params = [{transform_indices = @transform_0, window_bounds = array<i64: 1, 1>}, {transform_indices = @transform_1, window_bounds = array<i64: 8, 128>}, {transform_indices = @transform_2, window_bounds = array<i64: 8, 128>}]} {
    %c0 = arith.constant 0 : index
    %c0_0 = arith.constant 0 : index
    %0 = memref.load %arg1[%c0, %c0_0] : memref<1x1xf32, #tpu.memory_space<smem>>
    %c0_1 = arith.constant 0 : index
    %c0_2 = arith.constant 0 : index
    %1 = vector.load %arg2[%c0_1, %c0_2] : memref<8x128xf32, #tpu.memory_space<vmem>>, vector<8x128xf32>
    %2 = vector.broadcast %0 : f32 to vector<8x128xf32>
    %3 = arith.cmpf olt, %1, %2 : vector<8x128xf32>
    %4 = arith.extui %3 : vector<8x128xi1> to vector<8x128xi32>
    %5 = arith.sitofp %4 : vector<8x128xi32> to vector<8x128xf32>
    %c0_3 = arith.constant 0 : index
    %c0_4 = arith.constant 0 : index
    %6 = vector.load %arg3[%c0_3, %c0_4] : memref<8x128xf32, #tpu.memory_space<vmem>>, vector<8x128xf32>
    tpu.vector_store %arg3[%c0_3, %c0_4], %5 {strides = array<i32>} : memref<8x128xf32, #tpu.memory_space<vmem>>, vector<8x128xf32>,
    return
  }
  func.func @transform_0(%arg0: i32) -> (i32, i32) {
    %c0_i32 = arith.constant 0 : i32
    %c0_i32_0 = arith.constant 0 : i32
    %c0_i32_1 = arith.constant 0 : i32
    return %c0_i32, %c0_i32_0 : i32, i32
  }
  func.func @transform_1(%arg0: i32) -> (i32, i32) {
    %c0_i32 = arith.constant 0 : i32
    %c0_i32_0 = arith.constant 0 : i32
    return %arg0, %c0_i32 : i32, i32
  }
  func.func @transform_2(%arg0: i32) -> (i32, i32) {
    %c0_i32 = arith.constant 0 : i32
    %c0_i32_0 = arith.constant 0 : i32
    return %arg0, %c0_i32 : i32, i32
  }
}

</mosaic_0001>

<bundles_post_ra>
// kernel: tpu_custom_call.1
= control target key start
LH: loop header
LB: loop body
LE: loop exit
PB: predicated region body
PF: predicated region fallthrough
CT: control target
= control target key end

     0   :  { %8 = vsyncpa [#allocation4], 0  ;;  %s144_s0 = inlined_call_operand.<no memory space> [shape: f32[1,1], index: 0, kind: input, shape index: {}]   ;;  %s145_s1 = inlined_call_operand.hbm [shape: f32[8,128], index: 1, kind: input, shape index: {}]   ;;  %s146_s2 = inlined_call_operand.hbm [shape: f32[8,128], index: 2, kind: output, shape index: {}]  }
   0x1   :  { %9 = vsyncpa [#allocation5], 0  ;;  %s99_s9 = smov [#allocation3]   ;;  %s51_s13 = scalar_lea.hbm %s145_s1, 128 }
   0x2   :  { %s18_s10 = sshll.u32 %s99_s9, 4  ;;  %p52_p0 = scmp.ne.s32.totalorder %s145_s1, %s51_s13  ;;  %s19_s10 = int_to_ptr.vmem [resolvable:$true] %s18_s10 }
   0x3   :  { %p55_p1 = scmp.lt.u32.totalorder %s51_s13, %s145_s1 }
   0x5   :  { %p57_p2 = pnand %p55_p1, %p52_p0 }
   0x7   :  { %60 = shalt.err (!%p57_p2)
}
   0x8   :  { %s61_s18 = scalar_lea.vmem %s19_s10, 128  ;;  %p66_p4 = scmp.lt.s32.totalorder %s19_s10, %s19_s10 }
   0x9   :  { %p62_p3 = scmp.ne.s32.totalorder %s19_s10, %s61_s18  ;;  %p67_p5 = scmp.lt.s32.totalorder %s61_s18, %s61_s18 }
   0xb   :  { %p68_p6 = por %p67_p5, %p66_p4 }
   0xd   :  { %p69_p7 = pnand %p68_p6, %p62_p3 }
   0xf   :  { %72 = shalt.err (!%p69_p7)
}
  0x10   :  { %21 = dma.hbm_to_vmem [thread:$0]  %s145_s1, 128, %s19_s10, [#allocation4]  }
  0x11   :  { %95 = dma.done.wait [#allocation4], 128  }
  0x12   :  { %96 = vsyncadd [#allocation4], 4294967168  ;;  %v27_v0 = vstv %s144_s0  ;;  %s100_s23 = smov [#allocation6]   ;;  %v26_v1 = vld [vmem:[#allocation3] sm:$0xff]  ;;  %v101_v2 = vmov 0.0  }
  0x13   :  { %s38_s24 = sshll.u32 %s100_s23, 4  ;;  %vm28_vm0 = vcmp.lt.f32.partialorder %v26_v1, %v27_v0  ;;  %s39_s24 = int_to_ptr.vmem [resolvable:$true] %s38_s24 }
  0x14   :  { %v47_v3 = vsel %vm28_vm0, 1.0, %v101_v2  ;;  %s73_s25 = scalar_lea.vmem %s39_s24, 128  ;;  %p78_p9 = scmp.lt.s32.totalorder %s39_s24, %s39_s24 }
  0x15   :  { %31 = vst [vmem:[#allocation6] sm:$0xff] %v47_v3  ;;  %p74_p8 = scmp.ne.s32.totalorder %s39_s24, %s73_s25  ;;  %p79_p10 = scmp.lt.s32.totalorder %s73_s25, %s73_s25 }
  0x17   :  { %p80_p11 = por %p79_p10, %p78_p9 }
  0x19   :  { %p81_p12 = pnand %p80_p11, %p74_p8 }
  0x1b   :  { %84 = shalt.err (!%p81_p12)
}
  0x1c   :  { %s85_s27 = scalar_lea.hbm %s146_s2, 128 }
  0x1d   :  { %p86_p13 = scmp.ne.s32.totalorder %s146_s2, %s85_s27  ;;  %p89_p0 = scmp.lt.u32.totalorder %s85_s27, %s146_s2 }
  0x1f   :  { %p91_p1 = pnand %p89_p0, %p86_p13 }
  0x21   :  { %94 = shalt.err (!%p91_p1)
}
  0x22   :  { %41 = dma.vmem_to_hbm [thread:$0]  %s39_s24, 128, %s146_s2, [#allocation5]  }
  0x23   :  { %97 = dma.done.wait [#allocation5], 128  }
  0x24   :  { %98 = vsyncadd [#allocation5], 4294967168 }
  0x25   :  { %45 = vsyncpa [#allocation4], 1 }
  0x26   :  { %46 = vsyncpa [#allocation5], 1 }

</bundles_post_ra>
